<compile_context>
chip_gen: v7x
topology: tpu7x:2x2x1
jax: 0.10.0
libtpu: 0.0.40
codegen_flags: <defaults>
</compile_context>

<pallas_src>
import functools

import numpy as np
import jax
import jax.numpy as jnp
from jax import lax
from jax.experimental import pallas as pl
from jax.experimental.pallas import tpu as pltpu


def _time_corr_kernel(x_ref, xnext_ref, o_ref, *, TT, H, W):
    """One (batch*channel, time-tile) block.

    x_ref:     (1, TT, H*W)   current time tile
    xnext_ref: (1, 1, 1, H*W) frame following this tile (clamped to T-1 => replication pad)
    o_ref:     (1, TT, H*W)
    """
    HW = H * W

    # Column position along the folded H*W lane axis (hoisted; reused by both pools).
    col = lax.broadcasted_iota(jnp.int32, (1, HW), 1)
    if W & (W - 1) == 0:
        wpos = col & (W - 1)
    else:
        # Exact while H*W <= 2**24 (guarded in the wrapper); avoids vector int div/rem.
        colf = col.astype(jnp.float32)
        wpos = (colf - jnp.floor(colf / W) * W).astype(jnp.int32)
    has_left = wpos > 0             # destination may take its left  (w-1) neighbour
    has_right = wpos < W - 1        # destination may take its right (w+1) neighbour
    has_up = col >= W               # destination may take the image row above (h-1)
    has_down = col < (H - 1) * W    # destination may take the image row below (h+1)

    def pool9(y):
        """3x3 spatial window *sum* with zero padding, per frame, folded-HW layout.

        Separable: 2 row taps then 2 column taps, all produced with pltpu.roll (XLU)
        plus boundary masks -- no VMEM scratch traffic at all.  All shifts are
        non-negative; any wrapped-around values are always masked off.
        """
        if H > 1:
            from_up = jnp.where(has_up, pltpu.roll(y, shift=W, axis=1), 0.0)            # y[h-1, w]
            from_down = jnp.where(has_down, pltpu.roll(y, shift=HW - W, axis=1), 0.0)   # y[h+1, w]
            rs = y + from_up + from_down
        else:
            rs = y
        if W > 1:
            from_left = jnp.where(has_left, pltpu.roll(rs, shift=1, axis=1), 0.0)           # rs[h, w-1]
            from_right = jnp.where(has_right, pltpu.roll(rs, shift=HW - 1, axis=1), 0.0)    # rs[h, w+1]
            return rs + from_left + from_right
        return rs

    x = x_ref[0]                                          # (TT, HW)
    b = (x > 0).astype(jnp.float32)                       # bool_x for this tile
    b_last = (xnext_ref[0, 0] > 0).astype(jnp.float32)    # (1, HW) bool_x of the next frame

    cnt = pool9(b)                                        # 9 * AvgPool3d(bool_x); exact small ints

    # b_next[k] = bool_x[global_t(k) + 1]  (last frame replicated via the clamped lookahead).
    if TT > 1:
        b_next = jnp.concatenate([b[1:], b_last], axis=0)  # (TT, HW): one sublane shift
    else:
        b_next = b_last

    # around = (prev > 4/9) * bool_x_next  ==  (3x3 count >= 5) AND next-frame event.
    around = jnp.where(cnt > 4.5, b_next, 0.0)

    # Final AvgPool3d; single contiguous, lane/sublane-dense output store.
    o_ref[0, :, :] = pool9(around) * (1.0 / 9.0)


def _choose_time_tile(T, HW, cap_bytes=2 * 1024 * 1024):
    """Largest TT that divides T, is a multiple of 8 (or equals T), and keeps an
    f32 (TT, HW) block under cap_bytes (keeps v7x's 64 MiB VMEM comfortable)."""
    if T * HW * 4 <= cap_bytes:
        return T
    best = None
    for d in range(8, T, 8):
        if T % d == 0 and d * HW * 4 <= cap_bytes:
            best = d
    return best if best is not None else T


def time_corr_forward(x):
    """Pallas implementation of time_corr.forward for x of shape (B, C, T, H, W)."""
    B, C, T, H, W = x.shape
    HW = H * W
    BC = B * C

    if (W & (W - 1)) != 0 and HW > (1 << 24):
        # TODO(synk): integer-exact wpos path for non-power-of-two W with huge frames.
        raise NotImplementedError(
            "time_corr_forward: non-power-of-two W with H*W > 2**24 is not supported.")

    TT = _choose_time_tile(T, HW)
    NT = T // TT

    xf = x.reshape(BC, T, HW)                              # free row-major collapse
    # Lookahead frame for every time tile: frame (k+1)*TT, clamped to T-1, which reproduces
    # the ReplicationPad3d((0,0,0,0,0,1)) "repeat last frame" semantics.  Tiny: |x| / TT.
    next_idx = np.minimum((np.arange(NT) + 1) * TT, T - 1)
    x_next = xf[:, next_idx, :].reshape(BC, NT, 1, HW)

    kernel = functools.partial(_time_corr_kernel, TT=TT, H=H, W=W)

    # VMEM need: double-buffered in/out tiles + lookahead; modest, generation-safe headroom.
    block_bytes = 4 * (2 * TT * HW + HW)
    vmem_limit = int(min(max(4 * block_bytes, 8 * 1024 * 1024), 64 * 1024 * 1024))

    out = pl.pallas_call(
        kernel,
        out_shape=jax.ShapeDtypeStruct((BC, T, HW), jnp.float32),
        grid=(BC, NT),
        in_specs=[
            pl.BlockSpec((1, TT, HW), lambda i, t: (i, t, 0)),
            pl.BlockSpec((1, 1, 1, HW), lambda i, t: (i, t, 0, 0)),
        ],
        out_specs=pl.BlockSpec((1, TT, HW), lambda i, t: (i, t, 0)),
        compiler_params=pltpu.CompilerParams(
            dimension_semantics=("parallel", "parallel"),
            vmem_limit_bytes=vmem_limit,
        ),
    )(xf, x_next)
    return out.reshape(B, C, T, H, W)


def _reference(x):
    """Pure-JAX mirror of the PyTorch module (ground truth)."""
    x = x.astype(jnp.float32)
    bool_x = (x > 0).astype(jnp.float32)
    # ReplicationPad3d((0,0,0,0,0,1)): replicate the last frame at the end of T.
    bool_pad = jnp.concatenate([bool_x, bool_x[:, :, -1:]], axis=2)

    def pool(y):  # AvgPool3d((1,3,3), stride=1, padding=(0,1,1)), divisor 9.
        yp = jnp.pad(y, ((0, 0), (0, 0), (0, 0), (1, 1), (1, 1)))
        Hh, Ww = y.shape[-2], y.shape[-1]
        s = sum(yp[..., i:i + Hh, j:j + Ww] for i in range(3) for j in range(3))
        return s / 9.0

    prev = pool(bool_pad)
    around = prev[:, :, :-1] * bool_pad[:, :, 1:]
    around = (around > (4.0 / 9.0)).astype(jnp.float32)
    return pool(around)


if __name__ == "__main__":
    key = jax.random.PRNGKey(0)
    B, C, T, H, W = 2, 2, 4, 16, 16

    k1, k2 = jax.random.split(key)
    vals = jax.random.uniform(k1, (B, C, T, H, W), dtype=jnp.float32)
    keep = jax.random.uniform(k2, (B, C, T, H, W)) < 0.6   # dense enough to trip >4/9
    x = jnp.where(keep, vals, 0.0)

    out = time_corr_forward(x)
    jax.block_until_ready(out)

    ref = _reference(x)
    assert out.shape == (B, C, T, H, W)
    assert np.allclose(np.asarray(out), np.asarray(ref), rtol=1e-6, atol=1e-6)
    print("KERNEL_OK")
</pallas_src>

<mosaic_0001>
module attributes {stable_mosaic.version = 11 : i64} {
  func.func @_time_corr_kernel(%arg0: i32, %arg1: i32, %arg2: memref<1x4x256xf32, #tpu.memory_space<vmem>>, %arg3: memref<1x1x1x256xf32, #tpu.memory_space<vmem>>, %arg4: memref<1x4x256xf32, #tpu.memory_space<vmem>>) attributes {dimension_semantics = [#tpu.dimension_semantics<parallel>, #tpu.dimension_semantics<parallel>], iteration_bounds = array<i64: 4, 1>, scalar_prefetch = 0 : i64, scratch_operands = 0 : i64, tpu.core_type = #tpu.core_type<tc>, window_params = [{transform_indices = @transform_0, window_bounds = array<i64: 1, 4, 256>}, {transform_indices = @transform_1, window_bounds = array<i64: 1, 1, 1, 256>}, {transform_indices = @transform_2, window_bounds = array<i64: 1, 4, 256>}]} {
    %0 = tpu.iota {dimensions = array<i32: 1>} : vector<1x256xi32>
    %c15_i32 = arith.constant 15 : i32
    %1 = vector.broadcast %c15_i32 : i32 to vector<1x256xi32>
    %2 = arith.andi %0, %1 : vector<1x256xi32>
    %c0_i32 = arith.constant 0 : i32
    %3 = vector.broadcast %c0_i32 : i32 to vector<1x256xi32>
    %4 = arith.cmpi sgt, %2, %3 : vector<1x256xi32>
    %c15_i32_0 = arith.constant 15 : i32
    %5 = vector.broadcast %c15_i32_0 : i32 to vector<1x256xi32>
    %6 = arith.cmpi slt, %2, %5 : vector<1x256xi32>
    %c16_i32 = arith.constant 16 : i32
    %7 = vector.broadcast %c16_i32 : i32 to vector<1x256xi32>
    %8 = arith.cmpi sge, %0, %7 : vector<1x256xi32>
    %c240_i32 = arith.constant 240 : i32
    %9 = vector.broadcast %c240_i32 : i32 to vector<1x256xi32>
    %10 = arith.cmpi slt, %0, %9 : vector<1x256xi32>
    %c0 = arith.constant 0 : index
    %c0_1 = arith.constant 0 : index
    %c0_2 = arith.constant 0 : index
    %11 = vector.load %arg2[%c0, %c0_1, %c0_2] : memref<1x4x256xf32, #tpu.memory_space<vmem>>, vector<1x4x256xf32>
    %12 = vector.shape_cast %11 : vector<1x4x256xf32> to vector<4x256xf32>
    %cst = arith.constant 0.000000e+00 : f32
    %13 = vector.broadcast %cst : f32 to vector<4x256xf32>
    %14 = arith.cmpf ogt, %12, %13 : vector<4x256xf32>
    %15 = arith.extui %14 : vector<4x256xi1> to vector<4x256xi32>
    %16 = arith.sitofp %15 : vector<4x256xi32> to vector<4x256xf32>
    %c0_3 = arith.constant 0 : index
    %c0_4 = arith.constant 0 : index
    %c0_5 = arith.constant 0 : index
    %c0_6 = arith.constant 0 : index
    %17 = vector.load %arg3[%c0_3, %c0_4, %c0_5, %c0_6] : memref<1x1x1x256xf32, #tpu.memory_space<vmem>>, vector<1x1x1x256xf32>
    %18 = vector.shape_cast %17 : vector<1x1x1x256xf32> to vector<1x256xf32>
    %cst_7 = arith.constant 0.000000e+00 : f32
    %19 = vector.broadcast %cst_7 : f32 to vector<1x256xf32>
    %20 = arith.cmpf ogt, %18, %19 : vector<1x256xf32>
    %21 = arith.extui %20 : vector<1x256xi1> to vector<1x256xi32>
    %22 = arith.sitofp %21 : vector<1x256xi32> to vector<1x256xf32>
    %c16_i32_8 = arith.constant 16 : i32
    %23 = tpu.dynamic_rotate %16 by %c16_i32_8 dim 1 : vector<4x256xf32>, i32 -> vector<4x256xf32>
    %cst_9 = arith.constant 0.000000e+00 : f32
    %24 = vector.shape_cast %8 : vector<1x256xi1> to vector<1x256xi1>
    %25 = vector.broadcast %24 : vector<1x256xi1> to vector<4x256xi1>
    %26 = vector.broadcast %cst_9 : f32 to vector<4x256xf32>
    %27 = arith.select %25, %23, %26 : vector<4x256xi1>, vector<4x256xf32>
    %c240_i32_10 = arith.constant 240 : i32
    %28 = tpu.dynamic_rotate %16 by %c240_i32_10 dim 1 : vector<4x256xf32>, i32 -> vector<4x256xf32>
    %cst_11 = arith.constant 0.000000e+00 : f32
    %29 = vector.shape_cast %10 : vector<1x256xi1> to vector<1x256xi1>
    %30 = vector.broadcast %29 : vector<1x256xi1> to vector<4x256xi1>
    %31 = vector.broadcast %cst_11 : f32 to vector<4x256xf32>
    %32 = arith.select %30, %28, %31 : vector<4x256xi1>, vector<4x256xf32>
    %33 = arith.addf %16, %27 : vector<4x256xf32>
    %34 = arith.addf %33, %32 : vector<4x256xf32>
    %c1_i32 = arith.constant 1 : i32
    %35 = tpu.dynamic_rotate %34 by %c1_i32 dim 1 : vector<4x256xf32>, i32 -> vector<4x256xf32>
    %cst_12 = arith.constant 0.000000e+00 : f32
    %36 = vector.shape_cast %4 : vector<1x256xi1> to vector<1x256xi1>
    %37 = vector.broadcast %36 : vector<1x256xi1> to vector<4x256xi1>
    %38 = vector.broadcast %cst_12 : f32 to vector<4x256xf32>
    %39 = arith.select %37, %35, %38 : vector<4x256xi1>, vector<4x256xf32>
    %c255_i32 = arith.constant 255 : i32
    %40 = tpu.dynamic_rotate %34 by %c255_i32 dim 1 : vector<4x256xf32>, i32 -> vector<4x256xf32>
    %cst_13 = arith.constant 0.000000e+00 : f32
    %41 = vector.shape_cast %6 : vector<1x256xi1> to vector<1x256xi1>
    %42 = vector.broadcast %41 : vector<1x256xi1> to vector<4x256xi1>
    %43 = vector.broadcast %cst_13 : f32 to vector<4x256xf32>
    %44 = arith.select %42, %40, %43 : vector<4x256xi1>, vector<4x256xf32>
    %45 = arith.addf %34, %39 : vector<4x256xf32>
    %46 = arith.addf %45, %44 : vector<4x256xf32>
    %47 = vector.extract_strided_slice %16 {offsets = [1, 0], sizes = [3, 256], strides = [1, 1]} : vector<4x256xf32> to vector<3x256xf32>
    %48 = tpu.concatenate %47, %22 in 0 : vector<3x256xf32>, vector<1x256xf32> -> vector<4x256xf32>
    %cst_14 = arith.constant 4.500000e+00 : f32
    %49 = vector.broadcast %cst_14 : f32 to vector<4x256xf32>
    %50 = arith.cmpf ogt, %46, %49 : vector<4x256xf32>
    %cst_15 = arith.constant 0.000000e+00 : f32
    %51 = vector.broadcast %cst_15 : f32 to vector<4x256xf32>
    %52 = arith.select %50, %48, %51 : vector<4x256xi1>, vector<4x256xf32>
    %c16_i32_16 = arith.constant 16 : i32
    %53 = tpu.dynamic_rotate %52 by %c16_i32_16 dim 1 : vector<4x256xf32>, i32 -> vector<4x256xf32>
    %cst_17 = arith.constant 0.000000e+00 : f32
    %54 = vector.shape_cast %8 : vector<1x256xi1> to vector<1x256xi1>
    %55 = vector.broadcast %54 : vector<1x256xi1> to vector<4x256xi1>
    %56 = vector.broadcast %cst_17 : f32 to vector<4x256xf32>
    %57 = arith.select %55, %53, %56 : vector<4x256xi1>, vector<4x256xf32>
    %c240_i32_18 = arith.constant 240 : i32
    %58 = tpu.dynamic_rotate %52 by %c240_i32_18 dim 1 : vector<4x256xf32>, i32 -> vector<4x256xf32>
    %cst_19 = arith.constant 0.000000e+00 : f32
    %59 = vector.shape_cast %10 : vector<1x256xi1> to vector<1x256xi1>
    %60 = vector.broadcast %59 : vector<1x256xi1> to vector<4x256xi1>
    %61 = vector.broadcast %cst_19 : f32 to vector<4x256xf32>
    %62 = arith.select %60, %58, %61 : vector<4x256xi1>, vector<4x256xf32>
    %63 = arith.addf %52, %57 : vector<4x256xf32>
    %64 = arith.addf %63, %62 : vector<4x256xf32>
    %c1_i32_20 = arith.constant 1 : i32
    %65 = tpu.dynamic_rotate %64 by %c1_i32_20 dim 1 : vector<4x256xf32>, i32 -> vector<4x256xf32>
    %cst_21 = arith.constant 0.000000e+00 : f32
    %66 = vector.shape_cast %4 : vector<1x256xi1> to vector<1x256xi1>
    %67 = vector.broadcast %66 : vector<1x256xi1> to vector<4x256xi1>
    %68 = vector.broadcast %cst_21 : f32 to vector<4x256xf32>
    %69 = arith.select %67, %65, %68 : vector<4x256xi1>, vector<4x256xf32>
    %c255_i32_22 = arith.constant 255 : i32
    %70 = tpu.dynamic_rotate %64 by %c255_i32_22 dim 1 : vector<4x256xf32>, i32 -> vector<4x256xf32>
    %cst_23 = arith.constant 0.000000e+00 : f32
    %71 = vector.shape_cast %6 : vector<1x256xi1> to vector<1x256xi1>
    %72 = vector.broadcast %71 : vector<1x256xi1> to vector<4x256xi1>
    %73 = vector.broadcast %cst_23 : f32 to vector<4x256xf32>
    %74 = arith.select %72, %70, %73 : vector<4x256xi1>, vector<4x256xf32>
    %75 = arith.addf %64, %69 : vector<4x256xf32>
    %76 = arith.addf %75, %74 : vector<4x256xf32>
    %cst_24 = arith.constant 0.111111112 : f32
    %77 = vector.broadcast %cst_24 : f32 to vector<4x256xf32>
    %78 = arith.mulf %76, %77 : vector<4x256xf32>
    %c0_25 = arith.constant 0 : index
    %c0_26 = arith.constant 0 : index
    %c0_27 = arith.constant 0 : index
    %79 = vector.load %arg4[%c0_25, %c0_26, %c0_27] : memref<1x4x256xf32, #tpu.memory_space<vmem>>, vector<1x4x256xf32>
    %80 = vector.shape_cast %79 : vector<1x4x256xf32> to vector<4x256xf32>
    %81 = vector.shape_cast %78 : vector<4x256xf32> to vector<1x4x256xf32>
    tpu.vector_store %arg4[%c0_25, %c0_26, %c0_27], %81 {strides = array<i32>} : memref<1x4x256xf32, #tpu.memory_space<vmem>>, vector<1x4x256xf32>,
    return
  }
  func.func @transform_0(%arg0: i32, %arg1: i32) -> (i32, i32, i32) {
    %c0_i32 = arith.constant 0 : i32
    %c0_i32_0 = arith.constant 0 : i32
    return %arg0, %arg1, %c0_i32 : i32, i32, i32
  }
  func.func @transform_1(%arg0: i32, %arg1: i32) -> (i32, i32, i32, i32) {
    %c0_i32 = arith.constant 0 : i32
    %c0_i32_0 = arith.constant 0 : i32
    %c0_i32_1 = arith.constant 0 : i32
    return %arg0, %arg1, %c0_i32, %c0_i32_0 : i32, i32, i32, i32
  }
  func.func @transform_2(%arg0: i32, %arg1: i32) -> (i32, i32, i32) {
    %c0_i32 = arith.constant 0 : i32
    %c0_i32_0 = arith.constant 0 : i32
    return %arg0, %arg1, %c0_i32 : i32, i32, i32
  }
}

</mosaic_0001>

<bundles_post_ra>
// kernel: tpu_custom_call.1
= control target key start
LH: loop header
LB: loop body
LE: loop exit
PB: predicated region body
PF: predicated region fallthrough
CT: control target
= control target key end

     0   :  { %7 = vsyncpa [#allocation3], 0  ;;  %s1123_s0 = inlined_call_operand.hbm [shape: f32[4,4,256], index: 0, kind: input, shape index: {}]   ;;  %s1124_s1 = inlined_call_operand.hbm [shape: f32[4,1,1,256], index: 1, kind: input, shape index: {}]   ;;  %s1125_s2 = inlined_call_operand.hbm [shape: f32[4,4,256], index: 2, kind: output, shape index: {}]  }
   0x1   :  { %9 = vsyncpa [#allocation3 + $0x1], 0 }
   0x2   :  { %10 = vsyncpa [#allocation6], 0 }
   0x3   :  { %12 = vsyncpa [#allocation6 + $0x1], 0 }
   0x4   :  { %13 = vsyncpa [#allocation4], 0 }
   0x5   :  { %15 = vsyncpa [#allocation4 + $0x1], 0  ;;  %s807_s9 = smov 0   ;;  %s809_s10 = smov 0  }
   0x6   :  { %s811_s11 = smov 0   ;;  %s813_s12 = smov 0  }
   0x7   :  { %s815_s13 = smov 0   ;;  %s817_s14 = smov 0  }
   0x8 LB: > { %s530_s15 = sadd.s32 4294967295, %s782_s14   ;;  %s531_s16 = sadd.s32 4294967294, %s782_s14   ;;  %s782_s14 = sphi %s817_s14, %s21_s14   ;;  %s778_s13 = sphi %s815_s13, %s1152_s13   ;;  %s774_s12 = sphi %s813_s12, %s1151_s12   ;;  %s770_s11 = sphi %s811_s11, %s1150_s11   ;;  %s766_s10 = sphi %s809_s10, %s1149_s10   ;;  %s762_s9 = sphi %s807_s9, %s1148_s9  }
   0x9   : > { %s33_s17 = sadd.s32 1, %s778_s13  ;;  %s42_s18 = sadd.s32 1, %s770_s11 }
   0xa   : > { %p35_p0 = scmp.ge.s32.totalorder %s33_s17, 4  ;;  %p49_p1 = scmp.ne.s32.totalorder %s770_s11, %s766_s10 }
   0xb   : > { %p50_p2 = scmp.eq.s32.totalorder %s782_s14, 0  ;;  %p55_p3 = scmp.ne.s32.totalorder %s766_s10, %s762_s9 }
   0xc   : > { %s1154_s17 = smov (%p35_p0, %s33_s17), 0  ;;  %p56_p5 = scmp.eq.s32.totalorder %s530_s15, 0 }
   0xd   : > { %p848_p4 = por %p50_p2, %p49_p1  ;;  %s37_s20 = ssub.s32 %s778_s13, %s1154_s17 }
   0xe   : > { %p109_p6 = scmp.eq.s32.totalorder %s530_s15, 3  ;;  %p40_p7 = scmp.eq.s32.totalorder %s37_s20, 0 }
   0xf   : > { %p854_p8 = por %p56_p5, %p55_p3  ;;  %p115_p10 = scmp.eq.s32.totalorder %s531_s16, 3 }
  0x10   : > { %p858_p9 = por %p109_p6, %p49_p1  ;;  %p571_p12 = scmp.lt.s32.totalorder %s782_s14, 4 }
  0x11   : > { %s1129_s21 = scalar_select %p854_p8, 1, 0 }
  0x12   : > { %s1130_s22 = scalar_select %p858_p9, 1, 0 }
  0x13   : > { %s863_s23 = scalar_select %p40_p7, %s770_s11, %s42_s18  }
  0x14   : > { %p865_p11 = por %p115_p10, %p55_p3  ;;  %s871_s25 = sand.u32 1, %s770_s11  }
  0x15   : > { %s534_s26 = sshll.u32 %s871_s25, 3  ;;  %s551_s27 = sshll.u32 %s778_s13, 7 }
  0x16   : > { %s1131_s24 = scalar_select %p865_p11, 1, 0 }
  0x17   : > { %s878_s30 = scalar_lea.hbm %s1123_s0, %s551_s27  ;;  %s139_s3 = scalar_lea.vmem [#allocation2], %s534_s26 }
  0x18   : > { %s149_s4 = sshll.u32 %s139_s3, 4  ;;  %p884_p13 = pnand %p571_p12, %p848_p4  ;;  %s880_s4 = int_to_ptr.vmem [resolvable:$true] %s149_s4 }
  0x19   : > { %s136_s6 = scalar_lea.sflag [#allocation3], %s871_s25  ;;  %s636_s7 = scalar_lea.hbm %s878_s30, 128 }
  0x1a   : > { %p637_p2 = scmp.ne.s32.totalorder %s878_s30, %s636_s7  ;;  %p638_p3 = pneg %p884_p13 }
  0x1b   : > { %s641_s16 = scalar_lea.hbm %s1123_s0, 512  ;;  %p642_p4 = scmp.lt.u32.totalorder %s878_s30, %s1123_s0 }
  0x1c   : > { %p639_p5 = pnand %p638_p3, %p637_p2  ;;  %p643_p7 = scmp.lt.u32.totalorder %s641_s16, %s636_s7 }
  0x1d   : > { %p645_p12 = scmp.lt.u32.totalorder %s636_s7, %s878_s30 }
  0x1e   : > { %p640_p6 = pneg %p639_p5  ;;  %p644_p10 = por %p643_p7, %p642_p4 }
  0x20   : > { %p646_p0 = por %p645_p12, %p644_p10 }
  0x22   : > { %p647_p1 = pnand %p646_p0, %p640_p6 }
  0x24   : > { %650 = shalt.err (!%p647_p1)
}
  0x25   : > { %s651_s20 = scalar_lea.vmem %s880_s4, 128  ;;  %s784_s26 = smov [#allocation2]  }
  0x26   : > { %p652_p2 = scmp.ne.s32.totalorder %s880_s4, %s651_s20  ;;  %s656_s27 = sshll.u32 %s784_s26, 4  ;;  %s657_s27 = int_to_ptr.vmem [resolvable:$false] %s656_s27 }
  0x27   : > { %s658_s28 = scalar_lea.vmem %s657_s27, 256  ;;  %p659_p9 = scmp.lt.s32.totalorder %s880_s4, %s657_s27 }
  0x28   : > { %p654_p5 = pnand %p652_p2, %p638_p3  ;;  %p660_p4 = scmp.lt.s32.totalorder %s658_s28, %s651_s20 }
  0x2a   : > { %p655_p11 = pneg %p654_p5  ;;  %p661_p7 = por %p660_p4, %p659_p9 }
  0x2c   : > { %p662_p10 = pnand %p661_p7, %p655_p11 }
  0x2e   : > { %665 = shalt.err (!%p662_p10)
}
  0x2f   : > { %563 = dma.hbm_to_vmem [thread:$0]  (!%p884_p13), %s878_s30, 128, %s880_s4, %s136_s6  }
  0x30   : > { %p1133_p0 = scmp.lt.s32.totalorder %s782_s14, 5  ;;  %p1134_p1 = scmp.ge.s32.totalorder %s782_s14, 1 }
  0x31   : > { %s537_s3 = sshll.u32 %s871_s25, 1  ;;  %s552_s7 = sshll.u32 %s778_s13, 5 }
  0x32   : > { %p920_p6 = pnand %p1134_p1, %p1133_p0  ;;  %s929_s16 = scalar_lea.hbm %s1124_s1, %s552_s7 }
  0x33   : > { %s160_s18 = scalar_lea.vmem [#allocation5], %s537_s3  ;;  %s157_s30 = scalar_lea.sflag [#allocation6], %s871_s25 }
  0x34   : > { %s1135_s29 = scalar_select %p920_p6, 1, 0 }
  0x35   : > { %s170_s19 = sshll.u32 %s160_s18, 4  ;;  %s666_s4 = scalar_lea.hbm %s929_s16, 32  ;;  %s171_s19 = int_to_ptr.vmem [resolvable:$true] %s170_s19 }
  0x36   : > { %p667_p9 = scmp.ne.s32.totalorder %s929_s16, %s666_s4  ;;  %s671_s26 = scalar_lea.hbm %s1124_s1, 128 }
  0x37   : > { %p672_p2 = scmp.lt.u32.totalorder %s929_s16, %s1124_s1  ;;  %p673_p5 = scmp.lt.u32.totalorder %s671_s26, %s666_s4 }
  0x38   : > { %p669_p11 = pnand %p667_p9, %p638_p3  ;;  %p675_p7 = scmp.lt.u32.totalorder %s666_s4, %s929_s16 }
  0x39   : > { %p674_p4 = por %p673_p5, %p672_p2 }
  0x3a   : > { %p670_p12 = pneg %p669_p11 }
  0x3b   : > { %p676_p10 = por %p675_p7, %p674_p4 }
  0x3d   : > { %p677_p0 = pnand %p676_p10, %p670_p12 }
  0x3f   : > { %680 = shalt.err (!%p677_p0)
}
  0x40   : > { %s681_s25 = scalar_lea.vmem %s171_s19, 32  ;;  %s785_s3 = smov [#allocation5]  }
  0x41   : > { %p682_p1 = scmp.ne.s32.totalorder %s171_s19, %s681_s25  ;;  %s686_s7 = sshll.u32 %s785_s3, 4  ;;  %s687_s7 = int_to_ptr.vmem [resolvable:$false] %s686_s7 }
  0x42   : > { %s688_s8 = scalar_lea.vmem %s687_s7, 64  ;;  %p689_p8 = scmp.lt.s32.totalorder %s171_s19, %s687_s7 }
  0x43   : > { %p684_p9 = pnand %p682_p1, %p638_p3  ;;  %p690_p6 = scmp.lt.s32.totalorder %s688_s8, %s681_s25 }
  0x45   : > { %p685_p11 = pneg %p684_p9  ;;  %p691_p2 = por %p690_p6, %p689_p8 }
  0x47   : > { %p692_p5 = pnand %p691_p2, %p685_p11 }
  0x49   : > { %695 = shalt.err (!%p692_p5)
}
  0x4a   : > { %566 = dma.hbm_to_vmem [thread:$0]  (!%p884_p13), %s929_s16, 32, %s171_s19, %s157_s30  }
  0x4b   : > { %p1136_p12 = scmp.ne.s32.totalorder %s1135_s29, 0 }
  0x4c   : > { %s954_s15 = sand.u32 (!%p1136_p12), 1, %s766_s10   ;;  %p1137_p8 = scmp.ne.s32.totalorder (!%p1136_p12), %s1129_s21, 0 }
  0x4d   : > { %179 = sbr.rel (%p1136_p12) target bundleno = 623 (0x26f), region = 28  ;;  %s541_s18 = sshll.u32 (!%p1136_p12), %s954_s15, 3 }
  0x4e   : > { %s182_s4 = scalar_lea.sflag (!%p1136_p12), [#allocation3], %s954_s15  ;;  %s185_s6 = scalar_lea.vmem (!%p1136_p12), [#allocation2], %s541_s18 }
  0x54   : > { %749 = dma.done.wait (%p1137_p8), %s182_s4, 128  }
  0x55   : > { %751 = vsyncadd (%p1137_p8), %s182_s4, 4294967168  ;;  %s542_s5 = sshll.u32 %s954_s15, 1  ;;  %s191_s29 = scalar_lea.sflag [#allocation6], %s954_s15 }
  0x56   : > { %s194_s16 = scalar_lea.vmem [#allocation5], %s542_s5 }
  0x57   : > { %753 = dma.done.wait (%p1137_p8), %s191_s29, 32  }
  0x58   : > { %755 = vsyncadd (%p1137_p8), %s191_s29, 4294967264  ;;  %v220_v0 = vlaneseq  ;;  %v233_v4 = vld [vmem:[%s185_s6] sm:$0xff]  ;;  %v237_v5 = vld [vmem:[%s194_s16] sm:$0x3]  ;;  %v786_v6 = vmov 0.0   ;;  %s787_s19 = smov 16  }
  0x59   : > { %vm234_vm0 = vcmp.gt.f32.partialorder %v233_v4, 0.0  ;;  %vm238_vm1 = vcmp.gt.f32.partialorder %v237_v5, 0.0  ;;  %s788_s21 = smov 112   ;;  %vm334_vm6 = vcmask 1042432   ;;  %s789_s30 = smov 127  }
  0x5a   : > { %v325_v1 = vshrl.u32 %v220_v0, 7  ;;  %v544_v7 = vsel %vm234_vm0, 1.0, %v786_v6  ;;  %v545_v8 = vsel %vm238_vm1, 1.0, %v786_v6  ;;  %v972_v13 = vand.u32 127, %v220_v0  ;;  %s790_s20 = smov 1   ;;  %s553_s26 = sshll.u32 %s774_s12, 7 }
  0x5b   : > { %v242_v9 = vcombine.high %v544_v7, %v544_v7  ;;  %v319_v31 = vrot.slane %v544_v7, 1  ;;  %s219_s27 = scalar_lea.vmem [#allocation7], %s541_s18  ;;  %s1075_s7 = scalar_lea.hbm %s1125_s2, %s553_s26 }
  0x5c   : > { %v326_v2 = vsub.s32 0, %v325_v1  ;;  %v330_v3 = vsub.s32 1, %v325_v1  ;;  %vm248_vm2 = vcmp.lt.s32.totalorder %v972_v13, 16  ;;  %vm229_vm3 = vcmp.ge.s32.totalorder %v972_v13, 16  ;;  %s420_s28 = sshll.u32 %s219_s27, 4  ;;  %s404_s8 = scalar_lea.sflag [#allocation4], %s954_s15  ;;  %s1077_s28 = int_to_ptr.vmem [resolvable:$true] %s420_s28 }
  0x5d   : > { %v626_v12 = vpack.i.bf16 %v242_v9, %v544_v7  ;;  %v977_v17 = vadd.s32 128, %v972_v13  ;;  %vm261_vm4 = vcmp.lt.s32.totalorder %v972_v13, 112  ;;  %v320_v27 = vrot.slane %v242_v9, 1  ;;  %s696_s4 = scalar_lea.vmem %s1077_s28, 128  ;;  %p1146_p3 = scmp.ne.s32.totalorder %s1130_s22, 0 }
  0x5e   : > { %v327_v10 = vrot.slane %v545_v8, %v326_v2  ;;  %v331_v11 = vrot.slane %v545_v8, %v330_v3  ;;  %v223_v37 = vand.u32 15, %v972_v13  ;;  %vm287_vm7 = vcmp.lt.s32.totalorder %v972_v13, 1  ;;  %p697_p13 = scmp.ne.s32.totalorder %s1077_s28, %s696_s4  ;;  %s791_s12 = smov [#allocation7]  }
  0x5f   : > { %627 = vrot.lane.b32.xlu0 %v626_v12, %s787_s19  ;;  %vm232_vm5 = vcmp.lt.s32.totalorder %v977_v17, 240  ;;  %v224_v38 = vand.u32 15, %v977_v17  ;;  %vm300_vm10 = vcmp.lt.s32.totalorder %v972_v13, 127  ;;  %s700_s18 = sshll.u32 %s791_s12, 4  ;;  %s701_s18 = int_to_ptr.vmem [resolvable:$false] %s700_s18 }
  0x60   : > { %v335_v33 = vsel %vm334_vm6, %v319_v31, %v327_v10  ;;  %v336_v34 = vsel %vm334_vm6, %v320_v27, %v331_v11  ;;  %vm1000_vm8 = vcmp.gt.s32.totalorder %v223_v37, 0  ;;  %vm1017_vm11 = vcmp.lt.s32.totalorder %v223_v37, 15  ;;  %p698_p6 = pnand %p697_p13, %p1146_p3  ;;  %s702_s6 = scalar_lea.vmem %s701_s18, 256 }
  0x61   : > { %v340_v35 = vcombine.low %v335_v33, %v336_v34  ;;  %vm1004_vm9 = vcmp.gt.s32.totalorder %v224_v38, 0  ;;  %vm1021_vm12 = vcmp.lt.s32.totalorder %v224_v38, 15  ;;  %p703_p7 = scmp.lt.s32.totalorder %s1077_s28, %s701_s18  ;;  %p704_p10 = scmp.lt.s32.totalorder %s702_s6, %s696_s4 }
  0x62   : > { %p699_p4 = pneg %p698_p6 }
  0x63   : > { %632 = vrot.lane.b32.xlu0 %v626_v12, %s788_s21  ;;  %p705_p0 = por %p704_p10, %p703_p7 }
  0x65   : > { %p706_p1 = pnand %p705_p0, %p699_p4 }
  0xd1   : > { %v628_v14 = vpop.permute.xlu0 %627 }
  0xd2   : > { %v630_v15 = vunpack.i.h.bf16 %v628_v14  ;;  %v629_v16 = vunpack.i.l.bf16 %v628_v14 }
  0xd4   : > { %v249_v18 = vsel %vm248_vm2, %v629_v16, %v630_v15  ;;  %v250_v19 = vsel %vm248_vm2, %v630_v15, %v629_v16 }
  0xd5   : > { %v255_v20 = vsel %vm229_vm3, %v250_v19, 0.0  ;;  %v633_v21 = vpop.permute.xlu0 %632 }
  0xd6   : > { %v272_v22 = vcombine.low %v255_v20, %v249_v18  ;;  %v635_v23 = vunpack.i.h.bf16 %v633_v21  ;;  %v634_v24 = vunpack.i.l.bf16 %v633_v21 }
  0xd8   : > { %v262_v25 = vsel %vm261_vm4, %v634_v24, %v635_v23  ;;  %v263_v26 = vsel %vm261_vm4, %v635_v23, %v634_v24  ;;  %v274_v29 = vadd.f32 %v544_v7, %v272_v22 }
  0xd9   : > { %v269_v28 = vsel %vm232_vm5, %v263_v26, 0.0 }
  0xda   : > { %v277_v30 = vcombine.low %v262_v25, %v269_v28 }
  0xdc   : > { %v279_v32 = vadd.f32 %v277_v30, %v274_v29 }
  0xde   : > { %296 = vrot.lane.b32.xlu0 %v279_v32, %s789_s30  ;;  %283 = vrot.lane.b32.xlu1 %v279_v32, %s790_s20  ;;  %v281_v36 = vcombine.high %v279_v32, %v279_v32 }
  0xe2   : > { %285 = vrot.lane.b32.xlu1 %v281_v36, %s790_s20 }
  0xe6   : > { %298 = vrot.lane.b32.xlu1 %v281_v36, %s789_s30 }
 0x150   : > { %v284_v39 = vpop.permute.xlu1 %283  ;;  %v297_v50 = vpop.permute.xlu0 %296 }
 0x154   : > { %v286_v42 = vpop.permute.xlu1 %285 }
 0x155   : > { %v288_v43 = vsel %vm287_vm7, %v284_v39, %v286_v42  ;;  %v289_v44 = vsel %vm287_vm7, %v286_v42, %v284_v39 }
 0x156   : > { %v294_v45 = vsel %vm1000_vm8, %v289_v44, 0.0  ;;  %v295_v46 = vsel %vm1004_vm9, %v288_v43, 0.0 }
 0x157   : > { %v311_v47 = vcombine.low %v294_v45, %v295_v46 }
 0x158   : > { %v299_v51 = vpop.permute.xlu1 %298 }
 0x159   : > { %v301_v52 = vsel %vm300_vm10, %v297_v50, %v299_v51  ;;  %v302_v53 = vsel %vm300_vm10, %v299_v51, %v297_v50  ;;  %v313_v56 = vadd.f32 %v311_v47, %v279_v32 }
 0x15a   : > { %v307_v54 = vsel %vm1017_vm11, %v301_v52, 0.0  ;;  %v308_v55 = vsel %vm1021_vm12, %v302_v53, 0.0 }
 0x15b   : > { %v316_v57 = vcombine.low %v307_v54, %v308_v55 }
 0x15d   : > { %v318_v58 = vadd.f32 %v316_v57, %v313_v56 }
 0x15f   : > { %vm337_vm13 = vcmp.gt.f32.partialorder %v318_v58, 4.5 }
 0x160   : > { %v342_v59 = vsel %vm337_vm13, %v340_v35, 0.0 }
 0x161   : > { %346 = vrot.lane.b32.xlu0 %v342_v59, %s787_s19  ;;  %v344_v60 = vcombine.high %v342_v59, %v342_v59 }
 0x163   : > { %348 = vrot.lane.b32.xlu1 %v344_v60, %s787_s19 }
 0x165   : > { %354 = vrot.lane.b32.xlu0 %v342_v59, %s788_s21 }
 0x167   : > { %356 = vrot.lane.b32.xlu1 %v344_v60, %s788_s21 }
 0x1d3   : > { %v347_v61 = vpop.permute.xlu0 %346 }
 0x1d5   : > { %v349_v62 = vpop.permute.xlu1 %348 }
 0x1d6   : > { %v350_v63 = vsel %vm248_vm2, %v347_v61, %v349_v62  ;;  %v351_v0 = vsel %vm248_vm2, %v349_v62, %v347_v61 }
 0x1d7   : > { %v352_v1 = vsel %vm229_vm3, %v351_v0, 0.0  ;;  %v355_v3 = vpop.permute.xlu0 %354 }
 0x1d8   : > { %v364_v2 = vcombine.low %v352_v1, %v350_v63 }
 0x1d9   : > { %v357_v4 = vpop.permute.xlu1 %356 }
 0x1da   : > { %v358_v5 = vsel %vm261_vm4, %v355_v3, %v357_v4  ;;  %v359_v6 = vsel %vm261_vm4, %v357_v4, %v355_v3  ;;  %v366_v8 = vadd.f32 %v364_v2, %v342_v59 }
 0x1db   : > { %v361_v7 = vsel %vm232_vm5, %v359_v6, 0.0 }
 0x1dc   : > { %v369_v9 = vcombine.low %v358_v5, %v361_v7 }
 0x1de   : > { %v371_v10 = vadd.f32 %v369_v9, %v366_v8 }
 0x1e0   : > { %375 = vrot.lane.b32.xlu0 %v371_v10, %s790_s20  ;;  %v373_v11 = vcombine.high %v371_v10, %v371_v10 }
 0x1e2   : > { %377 = vrot.lane.b32.xlu1 %v373_v11, %s790_s20 }
 0x1e4   : > { %383 = vrot.lane.b32.xlu0 %v371_v10, %s789_s30 }
 0x1e6   : > { %385 = vrot.lane.b32.xlu1 %v373_v11, %s789_s30 }
 0x252   : > { %v376_v12 = vpop.permute.xlu0 %375 }
 0x254   : > { %v378_v14 = vpop.permute.xlu1 %377 }
 0x255   : > { %v379_v15 = vsel %vm287_vm7, %v376_v12, %v378_v14  ;;  %v380_v16 = vsel %vm287_vm7, %v378_v14, %v376_v12 }
 0x256   : > { %v381_v17 = vsel %vm1000_vm8, %v380_v16, 0.0  ;;  %v382_v18 = vsel %vm1004_vm9, %v379_v15, 0.0  ;;  %v384_v20 = vpop.permute.xlu0 %383 }
 0x257   : > { %v393_v19 = vcombine.low %v381_v17, %v382_v18 }
 0x258   : > { %v386_v21 = vpop.permute.xlu1 %385 }
 0x259   : > { %v387_v22 = vsel %vm300_vm10, %v384_v20, %v386_v21  ;;  %v388_v23 = vsel %vm300_vm10, %v386_v21, %v384_v20  ;;  %v395_v26 = vadd.f32 %v393_v19, %v371_v10 }
 0x25a   : > { %v389_v24 = vsel %vm1017_vm11, %v387_v22, 0.0  ;;  %v390_v25 = vsel %vm1021_vm12, %v388_v23, 0.0 }
 0x25b   : > { %v398_v27 = vcombine.low %v389_v24, %v390_v25 }
 0x25d   : > { %v400_v28 = vadd.f32 %v398_v27, %v395_v26 }
 0x25f   : > { %v401_v29 = vmul.f32 0.11111111, %v400_v28 }
 0x261   : > { %402 = vst [vmem:[%s219_s27] sm:$0xff] %v401_v29 }
 0x262   : > { %709 = shalt.err (!%p706_p1)
}
 0x263   : > { %s710_s15 = scalar_lea.hbm %s1075_s7, 128  ;;  %s714_s16 = scalar_lea.hbm %s1125_s2, 512 }
 0x264   : > { %p711_p9 = scmp.ne.s32.totalorder %s1075_s7, %s710_s15  ;;  %p715_p5 = scmp.lt.u32.totalorder %s1075_s7, %s1125_s2 }
 0x265   : > { %p716_p12 = scmp.lt.u32.totalorder %s714_s16, %s710_s15  ;;  %p718_p13 = scmp.lt.u32.totalorder %s710_s15, %s1075_s7 }
 0x266   : > { %p712_p11 = pnand %p711_p9, %p1146_p3 }
 0x267   : > { %p717_p8 = por %p716_p12, %p715_p5 }
 0x268   : > { %p713_p2 = pneg %p712_p11 }
 0x269   : > { %p719_p6 = por %p718_p13, %p717_p8 }
 0x26b   : > { %p720_p4 = pnand %p719_p6, %p713_p2 }
 0x26d   : > { %723 = shalt.err (!%p720_p4)
}
 0x26e   : > { %558 = dma.vmem_to_hbm [thread:$0]  (%p1146_p3), %s1077_s28, 128, %s1075_s7, %s404_s8  }
 0x26f PF: > { %p572_p7 = scmp.ge.s32.totalorder %s782_s14, 2  ;;  %s432_s30 = sand.u32 1, %s762_s9  }
 0x270   : > { %p1147_p10 = scmp.ne.s32.totalorder %s1131_s24, 0  ;;  %s433_s20 = scalar_lea.sflag [#allocation4], %s432_s30 }
 0x272   : > { %p568_p0 = pnand %p572_p7, %p1147_p10 }
 0x274   : > { %757 = dma.done.wait (!%p568_p0), %s433_s20, 128  }
 0x275   : > { %759 = vsyncadd (!%p568_p0), %s433_s20, 4294967168  ;;  %s21_s14 = sadd.s32 1, %s782_s14   ;;  %s1148_s9 = smov %s766_s10 }
 0x276   : > { %p18_p1 = scmp.ge.s32.totalorder %s21_s14, 6   ;;  %s1149_s10 = smov %s770_s11 }
 0x277   : > { %s1150_s11 = smov %s863_s23  ;;  %s1151_s12 = smov %s778_s13 }
 0x278   : > { %s1152_s13 = smov %s1154_s17  ;;  %20 = sbr.rel (!%p18_p1) target bundleno = 8 (0x8), region = 86 }
 0x27f   :  { %438 = vsyncpa [#allocation3], 1 }
 0x280   :  { %440 = vsyncpa [#allocation3 + $0x1], 1 }
 0x281   :  { %441 = vsyncpa [#allocation6], 1 }
 0x282   :  { %443 = vsyncpa [#allocation6 + $0x1], 1 }
 0x283   :  { %444 = vsyncpa [#allocation4], 1 }
 0x284   :  { %446 = vsyncpa [#allocation4 + $0x1], 1 }

</bundles_post_ra>
